<compile_context>
chip_gen: v6e
topology: v6e:2x2x1
jax: 0.10.0
libtpu: 0.0.40
codegen_flags: <defaults>
</compile_context>

<pallas_src>
import functools

import numpy as np
import jax
import jax.numpy as jnp
from jax.experimental import pallas as pl
from jax.experimental.pallas import tpu as pltpu

_VMEM_LIMIT = 48 * 1024 * 1024      # safe on v5e/v6e/v7x; raise on v6e if wanted
_S1_VMEM_BUDGET = 40 * 1024 * 1024  # gate for the in-kernel-im2col (s=1) path


def _round_up(x, m):
    return (x + m - 1) // m * m


def _autopad(k, p=None, d=1):
    if d > 1:
        k = d * (k - 1) + 1
    if p is None:
        p = k // 2
    return p


# ----------------------------------------------------------------------------
# Kernel 1: tiled matmul + folded-BN bias + SiLU  (k=1 convs / im2col fallback)
# grid = (M tiles, Cout tiles, K tiles); K is a reduction axis with f32 scratch
# ----------------------------------------------------------------------------
def _matmul_bias_act_kernel(x_ref, w_ref, b_ref, o_ref, acc_ref, *, apply_act):
    kk = pl.program_id(2)

    @pl.when(kk == 0)
    def _():
        acc_ref[...] = jnp.zeros_like(acc_ref)

    acc_ref[...] += jnp.dot(x_ref[...], w_ref[...],
                            preferred_element_type=jnp.float32)

    @pl.when(kk == pl.num_programs(2) - 1)
    def _():
        y = acc_ref[...] + b_ref[...]
        if apply_act:
            # SiLU with exp + reciprocal routed to the EUP slot
            y = y * pl.reciprocal(1.0 + jnp.exp(-y), approx=True)
        o_ref[...] = y.astype(o_ref.dtype)


def _pick_tn(cout):
    if cout % 256 == 0:
        return 256
    if cout % 128 == 0:
        return 128
    return cout          # full dim (masked stores only when cout < 128)


def _pick_tk(kdim):
    if kdim <= 2048:
        return kdim      # full dim -> single K step, no padding needed
    for cand in (1024, 512, 256, 128):
        if kdim % cand == 0:
            return cand
    return kdim


def fused_matmul_bias_act(x2, w, bias, *, g=1, apply_act=True, tm=512,
                          mxu_dtype=jnp.bfloat16, out_dtype=jnp.bfloat16):
    """out[m] = act(x2[m] @ w + bias); BN scale is already folded into w.

    g > 1: w / bias are the precomputed block-diagonal "lane packed" variants
    that emit the outputs of g consecutive pixels across 128 lanes.
    """
    M, K0 = x2.shape
    Kp, Ce = w.shape                      # Ce = g * cout
    assert Kp == g * K0
    cout = Ce // g

    Mg = pl.cdiv(M, g)                    # grouped rows
    br = min(_round_up(max(tm // g, 16), 16), _round_up(Mg, 16))
    Mg_p = _round_up(Mg, br)
    Mp = Mg_p * g
    if Mp != M:
        x2 = jnp.pad(x2, ((0, Mp - M), (0, 0)))
    xg = x2.reshape(Mg_p, g * K0).astype(mxu_dtype)
    wg = w.astype(mxu_dtype)
    bg = bias.reshape(1, Ce).astype(jnp.float32)

    K = g * K0
    tn = _pick_tn(Ce)
    tk = _pick_tk(K)
    grid = (Mg_p // br, Ce // tn, K // tk)

    kernel = functools.partial(_matmul_bias_act_kernel, apply_act=apply_act)
    out = pl.pallas_call(
        kernel,
        out_shape=jax.ShapeDtypeStruct((Mg_p, Ce), out_dtype),
        grid_spec=pltpu.PrefetchScalarGridSpec(
            num_scalar_prefetch=0,
            grid=grid,
            in_specs=[
                pl.BlockSpec((br, tk), lambda i, j, kk: (i, kk)),   # pixel tile
                pl.BlockSpec((tk, tn), lambda i, j, kk: (kk, j)),   # weights
                pl.BlockSpec((1, tn), lambda i, j, kk: (0, j)),     # BN bias
            ],
            out_specs=pl.BlockSpec((br, tn), lambda i, j, kk: (i, j)),
            scratch_shapes=[pltpu.VMEM((br, tn), jnp.float32)],
        ),
        compiler_params=pltpu.CompilerParams(
            dimension_semantics=("parallel", "parallel", "arbitrary"),
            vmem_limit_bytes=_VMEM_LIMIT,
        ),
    )(xg, wg, bg)
    out = out.reshape(Mg_p * g, cout)
    return out if Mp == M else out[:M]


# ----------------------------------------------------------------------------
# Kernel 2: k x k, stride-1 conv with in-kernel im2col (no HBM cols array).
# The flattened padded image stays in VMEM; tap (i,j) is a constant row shift
# of (i*Wp + j)*d, so the body is k*k shifted matmuls into an f32 accumulator.
# ----------------------------------------------------------------------------
def _conv_tap_kernel(x_ref, w_ref, b_ref, o_ref, acc_ref, *,
                     k, d, Wp, bm, apply_act):
    base = pl.program_id(1) * bm
    acc_ref[...] = jnp.zeros_like(acc_ref)
    for i in range(k):
        for j in range(k):
            off = (i * Wp + j) * d                     # static per-tap shift
            xt = x_ref[pl.ds(base + off, bm), :]       # (bm, Cin) bf16
            acc_ref[...] += jnp.dot(xt, w_ref[i * k + j],
                                    preferred_element_type=jnp.float32)
    y = acc_ref[...] + b_ref[...]
    if apply_act:
        y = y * pl.reciprocal(1.0 + jnp.exp(-y), approx=True)
    o_ref[...] = y.astype(o_ref.dtype)


def _s1_geom(H, W, k, d, pad, bm_max=256):
    Hp, Wp = H + 2 * pad, W + 2 * pad
    Ho, Wo = Hp - d * (k - 1), Wp - d * (k - 1)
    M = Ho * Wp                              # flat outputs incl. garbage cols
    bm = min(bm_max, _round_up(M, 8))
    M_pad = _round_up(M, bm)
    max_off = d * (k - 1) * (Wp + 1)
    return Hp, Wp, Ho, Wo, M, bm, M_pad, max_off


def _s1_vmem_bytes(R, C, k, cout, tn, bm):
    return (2 * R * C * 2                 # flattened image slab (double buf)
            + 2 * k * k * C * tn * 2      # weight tile
            + 2 * bm * tn * 2             # output tile
            + bm * tn * 4                 # f32 accumulator scratch
            + 2 * tn * 4)                 # bias


def conv_kxk_s1(x_bf, w, bias, *, k, d, pad, apply_act,
                out_dtype=jnp.bfloat16, mxu_dtype=jnp.bfloat16):
    N, H, W, C = x_bf.shape
    cout = w.shape[1]
    Hp, Wp, Ho, Wo, M, bm, M_pad, max_off = _s1_geom(H, W, k, d, pad)

    rows_needed = M_pad + max_off
    extra_rows = max(0, (rows_needed - Hp * Wp + Wp - 1) // Wp)
    xp = jnp.pad(x_bf, ((0, 0), (pad, pad + extra_rows), (pad, pad), (0, 0)))
    R = (Hp + extra_rows) * Wp
    xflat = xp.reshape(N, R, C).astype(mxu_dtype)

    w3 = w.reshape(k * k, C, cout).astype(mxu_dtype)
    b2 = bias.reshape(1, cout).astype(jnp.float32)

    tn = 128 if cout % 128 == 0 else cout
    grid = (N, M_pad // bm, cout // tn)

    kernel = functools.partial(_conv_tap_kernel, k=k, d=d, Wp=Wp, bm=bm,
                               apply_act=apply_act)
    out = pl.pallas_call(
        kernel,
        out_shape=jax.ShapeDtypeStruct((N, M_pad, cout), out_dtype),
        grid_spec=pltpu.PrefetchScalarGridSpec(
            num_scalar_prefetch=0,
            grid=grid,
            in_specs=[
                # Whole flattened padded image: DMA'd once per image (index
                # depends only on n), all k*k taps are then read from VMEM.
                # TODO(synk): pipeline_mode=pl.Buffered(1) would drop the
                # second buffer of this grid-invariant slab if Mosaic keeps it.
                pl.BlockSpec((None, R, C), lambda n, m, co: (n, 0, 0)),
                pl.BlockSpec((k * k, C, tn), lambda n, m, co: (0, 0, co)),
                pl.BlockSpec((1, tn), lambda n, m, co: (0, co)),
            ],
            out_specs=pl.BlockSpec((None, bm, tn), lambda n, m, co: (n, m, co)),
            scratch_shapes=[pltpu.VMEM((bm, tn), jnp.float32)],
        ),
        compiler_params=pltpu.CompilerParams(
            dimension_semantics=("parallel", "parallel", "parallel"),
            vmem_limit_bytes=_VMEM_LIMIT,
        ),
    )(xflat, w3, b2)
    # Drop the (Wp - Wo) garbage columns per row (small slice; ~2p/Wp extra).
    return out[:, :M, :].reshape(N, Ho, Wp, cout)[:, :, :Wo, :]


# ----------------------------------------------------------------------------
# im2col fallback (strided convs / oversized images), done in bf16
# ----------------------------------------------------------------------------
def _im2col(x, k, s, p, d):
    N, H, W, C = x.shape
    xp = jnp.pad(x, ((0, 0), (p, p), (p, p), (0, 0)))
    Ho = (H + 2 * p - d * (k - 1) - 1) // s + 1
    Wo = (W + 2 * p - d * (k - 1) - 1) // s + 1
    cols = [xp[:, i * d: i * d + (Ho - 1) * s + 1: s,
               j * d: j * d + (Wo - 1) * s + 1: s, :]
            for i in range(k) for j in range(k)]
    return jnp.concatenate(cols, axis=-1).reshape(N * Ho * Wo, k * k * C), Ho, Wo


# ----------------------------------------------------------------------------
# Conv module forward: SiLU(BN(Conv2d(x))) in eval mode, NHWC
# ----------------------------------------------------------------------------
def conv_bn_silu(x_nhwc, params, *, k=1, s=1, p=None, d=1, act=True,
                 tm=512, mxu_dtype=jnp.bfloat16, out_dtype=jnp.bfloat16):
    # TODO(synk): grouped convolution (g > 1 in the PyTorch module) not implemented.
    pad = _autopad(k, p, d)
    x_bf = x_nhwc.astype(mxu_dtype)          # cast BEFORE pad / im2col / reshape
    N, H, W, C = x_bf.shape
    w, bias = params['w'], params['bias']
    cout = w.shape[1]

    if k == 1:
        Ho = (H + 2 * pad - 1) // s + 1
        Wo = (W + 2 * pad - 1) // s + 1
        xs = x_bf
        if pad:
            xs = jnp.pad(xs, ((0, 0), (pad, pad), (pad, pad), (0, 0)))
        if s > 1 or pad:
            xs = xs[:, :(Ho - 1) * s + 1:s, :(Wo - 1) * s + 1:s, :]
        x2 = xs.reshape(N * Ho * Wo, C)
    else:
        if s == 1:
            Hp, Wp, Ho, Wo, M, bm, M_pad, max_off = _s1_geom(H, W, k, d, pad)
            tn = 128 if cout % 128 == 0 else cout
            R_est = M_pad + max_off + Wp
            if _s1_vmem_bytes(R_est, C, k, cout, tn, bm) <= _S1_VMEM_BUDGET:
                return conv_kxk_s1(x_bf, w, bias, k=k, d=d, pad=pad,
                                   apply_act=act, out_dtype=out_dtype,
                                   mxu_dtype=mxu_dtype)
        # strided conv (or oversized image): wrapper-side im2col in bf16
        x2, Ho, Wo = _im2col(x_bf, k, s, pad, d)

    g = params.get('g', 1)
    if g > 1:
        out2 = fused_matmul_bias_act(x2, params['w_packed'],
                                     params['bias_packed'], g=g,
                                     apply_act=act, tm=tm,
                                     mxu_dtype=mxu_dtype, out_dtype=out_dtype)
    else:
        out2 = fused_matmul_bias_act(x2, w, bias, g=1, apply_act=act, tm=tm,
                                     mxu_dtype=mxu_dtype, out_dtype=out_dtype)
    return out2.reshape(N, Ho, Wo, cout)


# ----------------------------------------------------------------------------
# Parameter setup: fold BatchNorm (eval mode) into the conv weight; packing
# for narrow Cout is prepared here once (not per forward call).
# ----------------------------------------------------------------------------
def make_conv_params(key, cin, cout, k=1, eps=1e-5):
    kw, kg, kb, km, kv = jax.random.split(key, 5)
    w4 = jax.random.normal(kw, (k, k, cin, cout), jnp.float32) / np.sqrt(cin * k * k)
    gamma = 1.0 + 0.1 * jax.random.normal(kg, (cout,), jnp.float32)
    beta = 0.1 * jax.random.normal(kb, (cout,), jnp.float32)
    mean = 0.1 * jax.random.normal(km, (cout,), jnp.float32)
    var = jnp.abs(jax.random.normal(kv, (cout,), jnp.float32)) + 0.5
    scale = gamma * jax.lax.rsqrt(var + eps)
    w = (w4 * scale).reshape(k * k * cin, cout)      # BN scale folded in
    bias = beta - mean * scale
    params = dict(w=w, bias=bias)

    # Lane-dense packing: g = 128 // cout pixels per output row via a
    # block-diagonal weight -> unmasked full-lane stores.  Gated on small K
    # (memory-bound regime): packing multiplies MXU FLOPs by g, bytes by g^2.
    K = k * k * cin
    if cout < 128 and 128 % cout == 0 and K <= 1024:
        g = 128 // cout
        w_packed = (jnp.eye(g, dtype=w.dtype)[:, None, :, None]
                    * w[None, :, None, :]).reshape(g * K, g * cout)
        params.update(g=g, w_packed=w_packed, bias_packed=jnp.tile(bias, g))
    return params


# ----------------------------------------------------------------------------
# Plain-JAX reference (same folded weights, same bf16 operand rounding)
# ----------------------------------------------------------------------------
def ref_conv_bn_silu(x, prm, *, k=1, s=1, p=None, d=1, act=True):
    pad = _autopad(k, p, d)
    cin = x.shape[-1]
    w4 = prm['w'].reshape(k, k, cin, -1)
    xm = x.astype(jnp.bfloat16).astype(jnp.float32)
    wm = w4.astype(jnp.bfloat16).astype(jnp.float32)
    y = jax.lax.conv_general_dilated(
        xm, wm, window_strides=(s, s), padding=[(pad, pad), (pad, pad)],
        rhs_dilation=(d, d), dimension_numbers=('NHWC', 'HWIO', 'NHWC'),
        precision=jax.lax.Precision.HIGHEST)
    y = y + prm['bias']
    return y * jax.nn.sigmoid(y) if act else y


def _check(y, y_ref, name):
    np.testing.assert_allclose(np.asarray(y, dtype=np.float32),
                               np.asarray(y_ref, dtype=np.float32),
                               rtol=3e-2, atol=3e-2, err_msg=name)


if __name__ == "__main__":
    key = jax.random.PRNGKey(0)
    kx, k1, k2, k3, k4, k5 = jax.random.split(key, 6)

    N, H, W, C1 = 2, 16, 16, 8
    x = jax.random.normal(kx, (N, H, W, C1), jnp.float32)   # NHWC

    cases = [
        # (name, params, conv kwargs, expected output shape)
        ("k1_cout32_packed", make_conv_params(k1, C1, 32, k=1),
         dict(k=1), (2, 16, 16, 32)),                         # matmul + g=4
        ("k3_s1_inkernel", make_conv_params(k2, C1, 32, k=3),
         dict(k=3, s=1), (2, 16, 16, 32)),                    # in-kernel im2col
        ("k3_s2_im2col", make_conv_params(k3, C1, 16, k=3),
         dict(k=3, s=2), (2, 8, 8, 16)),                      # fallback + g=8
        ("k1_cout128", make_conv_params(k4, C1, 128, k=1),
         dict(k=1), (2, 16, 16, 128)),                        # full-lane matmul
        ("k3_d2_inkernel", make_conv_params(k5, C1, 32, k=3),
         dict(k=3, s=1, d=2), (2, 16, 16, 32)),               # dilated, in-kernel
        ("k1_cout128_noact", make_conv_params(k4, C1, 128, k=1),
         dict(k=1, act=False), (2, 16, 16, 128)),             # identity act
    ]

    for name, prm, kw, shp in cases:
        y = conv_bn_silu(x, prm, **kw)
        jax.block_until_ready(y)
        assert y.shape == shp, (name, y.shape, shp)
        _check(y, ref_conv_bn_silu(x, prm, **kw), name)

    print("KERNEL_OK")
</pallas_src>

<mosaic_0001>
module attributes {stable_mosaic.version = 11 : i64} {
  func.func @_matmul_bias_act_kernel(%arg0: i32, %arg1: i32, %arg2: i32, %arg3: memref<128x32xbf16, #tpu.memory_space<vmem>>, %arg4: memref<32x128xbf16, #tpu.memory_space<vmem>>, %arg5: memref<1x128xf32, #tpu.memory_space<vmem>>, %arg6: memref<128x128xbf16, #tpu.memory_space<vmem>>, %arg7: memref<128x128xf32, #tpu.memory_space<vmem>>) attributes {dimension_semantics = [#tpu.dimension_semantics<parallel>, #tpu.dimension_semantics<parallel>, #tpu.dimension_semantics<arbitrary>], iteration_bounds = array<i64: 1, 1, 1>, scalar_prefetch = 0 : i64, scratch_operands = 1 : i64, tpu.core_type = #tpu.core_type<tc>, window_params = [{transform_indices = @transform_0, window_bounds = array<i64: 128, 32>}, {transform_indices = @transform_1, window_bounds = array<i64: 32, 128>}, {transform_indices = @transform_2, window_bounds = array<i64: 1, 128>}, {transform_indices = @transform_3, window_bounds = array<i64: 128, 128>}]} {
    %c0_i32 = arith.constant 0 : i32
    %0 = arith.cmpi eq, %arg2, %c0_i32 : i32
    %1 = arith.extui %0 : i1 to i32
    %c0_i32_0 = arith.constant 0 : i32
    %2 = arith.cmpi ne, %1, %c0_i32_0 : i32
    scf.if %2 {
      %cst_10 = arith.constant 0.000000e+00 : f32
      %12 = vector.broadcast %cst_10 : f32 to vector<128x128xf32>
      %c0_11 = arith.constant 0 : index
      %c0_12 = arith.constant 0 : index
      %13 = vector.load %arg7[%c0_11, %c0_12] : memref<128x128xf32, #tpu.memory_space<vmem>>, vector<128x128xf32>
      tpu.vector_store %arg7[%c0_11, %c0_12], %12 {strides = array<i32>} : memref<128x128xf32, #tpu.memory_space<vmem>>, vector<128x128xf32>,
    } else {
    }
    %c0 = arith.constant 0 : index
    %c0_1 = arith.constant 0 : index
    %3 = vector.load %arg7[%c0, %c0_1] : memref<128x128xf32, #tpu.memory_space<vmem>>, vector<128x128xf32>
    %c0_2 = arith.constant 0 : index
    %c0_3 = arith.constant 0 : index
    %4 = vector.load %arg3[%c0_2, %c0_3] : memref<128x32xbf16, #tpu.memory_space<vmem>>, vector<128x32xbf16>
    %c0_4 = arith.constant 0 : index
    %c0_5 = arith.constant 0 : index
    %5 = vector.load %arg4[%c0_4, %c0_5] : memref<32x128xbf16, #tpu.memory_space<vmem>>, vector<32x128xbf16>
    %cst = arith.constant dense<0.000000e+00> : vector<128x128xf32>
    %6 = tpu.matmul %4, %5, %cst {dimension_numbers = #tpu.dot_dimension_numbers<[1], [0], [0], [1], [0, 0, 1, 1], [], []>} : vector<128x32xbf16>, vector<32x128xbf16>, vector<128x128xf32> -> vector<128x128xf32>
    %7 = arith.addf %3, %6 : vector<128x128xf32>
    %c0_6 = arith.constant 0 : index
    %c0_7 = arith.constant 0 : index
    %8 = vector.load %arg7[%c0_6, %c0_7] : memref<128x128xf32, #tpu.memory_space<vmem>>, vector<128x128xf32>
    tpu.vector_store %arg7[%c0_6, %c0_7], %7 {strides = array<i32>} : memref<128x128xf32, #tpu.memory_space<vmem>>, vector<128x128xf32>,
    %c0_i32_8 = arith.constant 0 : i32
    %9 = arith.cmpi eq, %arg2, %c0_i32_8 : i32
    %10 = arith.extui %9 : i1 to i32
    %c0_i32_9 = arith.constant 0 : i32
    %11 = arith.cmpi ne, %10, %c0_i32_9 : i32
    scf.if %11 {
      %c0_10 = arith.constant 0 : index
      %c0_11 = arith.constant 0 : index
      %12 = vector.load %arg7[%c0_10, %c0_11] : memref<128x128xf32, #tpu.memory_space<vmem>>, vector<128x128xf32>
      %c0_12 = arith.constant 0 : index
      %c0_13 = arith.constant 0 : index
      %13 = vector.load %arg5[%c0_12, %c0_13] : memref<1x128xf32, #tpu.memory_space<vmem>>, vector<1x128xf32>
      %14 = vector.broadcast %13 : vector<1x128xf32> to vector<128x128xf32>
      %15 = arith.addf %12, %14 : vector<128x128xf32>
      %cst_14 = arith.constant 0.000000e+00 : f32
      %16 = vector.broadcast %cst_14 : f32 to vector<128x128xf32>
      %17 = arith.subf %16, %15 : vector<128x128xf32>
      %18 = math.exp %17 : vector<128x128xf32>
      %cst_15 = arith.constant 1.000000e+00 : f32
      %19 = vector.broadcast %cst_15 : f32 to vector<128x128xf32>
      %20 = arith.addf %19, %18 : vector<128x128xf32>
      %21 = tpu.reciprocal %20 {approx = true} : vector<128x128xf32> -> vector<128x128xf32>
      %22 = arith.mulf %15, %21 : vector<128x128xf32>
      %23 = arith.truncf %22 : vector<128x128xf32> to vector<128x128xbf16>
      %c0_16 = arith.constant 0 : index
      %c0_17 = arith.constant 0 : index
      %24 = vector.load %arg6[%c0_16, %c0_17] : memref<128x128xbf16, #tpu.memory_space<vmem>>, vector<128x128xbf16>
      tpu.vector_store %arg6[%c0_16, %c0_17], %23 {strides = array<i32>} : memref<128x128xbf16, #tpu.memory_space<vmem>>, vector<128x128xbf16>,
    } else {
    }
    return
  }
  func.func @transform_0(%arg0: i32, %arg1: i32, %arg2: i32) -> (i32, i32) {
    %c0_i32 = arith.constant 0 : i32
    return %arg0, %arg2 : i32, i32
  }
  func.func @transform_1(%arg0: i32, %arg1: i32, %arg2: i32) -> (i32, i32) {
    %c0_i32 = arith.constant 0 : i32
    return %arg2, %arg1 : i32, i32
  }
  func.func @transform_2(%arg0: i32, %arg1: i32, %arg2: i32) -> (i32, i32) {
    %c0_i32 = arith.constant 0 : i32
    %c0_i32_0 = arith.constant 0 : i32
    return %c0_i32, %arg1 : i32, i32
  }
  func.func @transform_3(%arg0: i32, %arg1: i32, %arg2: i32) -> (i32, i32) {
    %c0_i32 = arith.constant 0 : i32
    return %arg0, %arg1 : i32, i32
  }
}

</mosaic_0001>

<bundles_post_ra>
// kernel: tpu_custom_call.1
= control target key start
LH: loop header
LB: loop body
LE: loop exit
PB: predicated region body
PF: predicated region fallthrough
CT: control target
= control target key end

     0   :  { %vm124_vm0 = vcmask 261120   ;;  %s892_s0 = inlined_call_operand.vmem [shape: bf16[128,32], index: 0, kind: input, shape index: {}]   ;;  %s893_s1 = inlined_call_operand.vmem [shape: bf16[32,128], index: 1, kind: input, shape index: {}]   ;;  %s894_s2 = inlined_call_operand.vmem [shape: f32[1,128], index: 2, kind: input, shape index: {}]   ;;  %s895_s3 = inlined_call_operand.hbm [shape: bf16[128,128], index: 3, kind: output, shape index: {}]  }
   0x1   :  { %v647_v0 = vld [vmem:[%s893_s1 + $0x8] sm:$0xff]   ;;  %v648_v1 = vld [vmem:[%s893_s1] sm:$0xff]   ;;  %v653_v6 = vld [vmem:[%s892_s0 + $0x10] sm:$0xff]  }
   0x2   :  { %620 = vmatprep.subr.bf16.mxu0 %v647_v0  ;;  %640 = vmatprep.subr.bf16.mxu1 %v647_v0  ;;  %v649_v2 = vld [vmem:[%s892_s0] sm:$0xff]   ;;  %v651_v4 = vld [vmem:[%s892_s0 + $0x8] sm:$0xff]   ;;  %v654_v7 = vld [vmem:[%s892_s0 + $0x30] sm:$0xff]  }
   0x3   :  { %621 = vmatpush3.bf16.msra.mxu0 %v647_v0  ;;  %642 = vmatpush3.bf16.msra.mxu1 %v647_v0  ;;  %v650_v3 = vld [vmem:[%s892_s0 + $0x20] sm:$0xff]   ;;  %v652_v5 = vld [vmem:[%s892_s0 + $0x28] sm:$0xff]  }
   0x4   :  { %622 = vmatprep.subr.bf16.mxu0 %v648_v1  ;;  %641 = vmatprep.subr.bf16.mxu1 %v648_v1 }
   0x5   :  { %624 = vmatprep.mubr.msk.bf16.mxu0 %vm124_vm0, %v649_v2  ;;  %632 = vmatprep.mubr.msk.bf16.mxu1 %vm124_vm0, %v650_v3 }
   0x7   :  { %623 = vmatpush3.bf16.msra.mxu0 %v648_v1  ;;  %643 = vmatpush3.bf16.msra.mxu1 %v648_v1 }
   0xa   :  { %625 = vmatmul.mubr.msk.bf16.vlgmr.msra.gmra.mxu0 %vm124_vm0, %v651_v4  ;;  %633 = vmatmul.mubr.msk.bf16.vlgmr.msra.gmra.mxu1 %vm124_vm0, %v652_v5 }
   0xb   :  { %8 = vsyncpa [#allocation4], 0  ;;  %628 = vmatprep.mubr.msk.bf16.mxu0 %vm124_vm0, %v653_v6  ;;  %636 = vmatprep.mubr.msk.bf16.mxu1 %vm124_vm0, %v654_v7  ;;  %v655_v8 = vld [vmem:[%s892_s0 + $0x18] sm:$0xff]   ;;  %v807_v10 = vld [vmem:[%s894_s2] ss:$0 sm:$0xff] }
   0xc   :  { %v656_v9 = vld [vmem:[%s892_s0 + $0x38] sm:$0xff]   ;;  %s743_s0 = smov [#allocation3]  }
   0xd   :  { %s501_s2 = sshll.u32 %s743_s0, 4  ;;  %s502_s2 = int_to_ptr.vmem [resolvable:$true] %s501_s2 }
   0xe   :  { %s721_s6 = scalar_lea.vmem %s502_s2, 1024  ;;  %p726_p1 = scmp.lt.s32.totalorder %s502_s2, %s502_s2 }
   0xf   :  { %p722_p0 = scmp.ne.s32.totalorder %s502_s2, %s721_s6  ;;  %p727_p2 = scmp.lt.s32.totalorder %s721_s6, %s721_s6 }
  0x11   :  { %p728_p3 = por %p727_p2, %p726_p1 }
  0x12   :  { %629 = vmatmul.mubr.msk.bf16.gmra.mxu0 %vm124_vm0, %v655_v8  ;;  %637 = vmatmul.mubr.msk.bf16.gmra.mxu1 %vm124_vm0, %v656_v9 }
  0x13   :  { %p729_p4 = pnand %p728_p3, %p722_p0 }
  0xca   :  { %v626_v11 = vpop.f32.mrf.mxu0  ;;  %v634_v12 = vpop.f32.mrf.mxu1 }
  0xcb   :  { %v810_v13 = vadd.f32 %v626_v11, %v807_v10  ;;  %v813_v14 = vadd.f32 %v634_v12, %v807_v10 }
  0xcc   :  { %v183_v15 = vpop.f32.mrf.mxu0  ;;  %v215_v16 = vpop.f32.mrf.mxu1 }
  0xcd   :  { %v322_v17 = vsub.f32 0.0, %v810_v13  ;;  %v330_v18 = vsub.f32 0.0, %v813_v14  ;;  %v818_v19 = vadd.f32 %v807_v10, %v183_v15  ;;  %v821_v20 = vadd.f32 %v807_v10, %v215_v16 }
  0xce   :  { %v627_v21 = vpop.f32.mrf.mxu0  ;;  %v635_v22 = vpop.f32.mrf.mxu1 }
  0xcf   :  { %v340_v23 = vmul.f32 1.442695, %v322_v17  ;;  %v356_v24 = vmul.f32 1.442695, %v330_v18  ;;  %v320_v25 = vsub.f32 0.0, %v818_v19  ;;  %v328_v26 = vsub.f32 0.0, %v821_v20 }
  0xd0   :  { %v826_v27 = vadd.f32 %v627_v21, %v807_v10  ;;  %v829_v28 = vadd.f32 %v635_v22, %v807_v10  ;;  %v186_v29 = vpop.f32.mrf.mxu0  ;;  %v218_v30 = vpop.f32.mrf.mxu1 }
  0xd1   :  { %657 = vpow2.f32 %v340_v23  ;;  %v336_v31 = vmul.f32 1.442695, %v320_v25  ;;  %v352_v32 = vmul.f32 1.442695, %v328_v26  ;;  %v832_v33 = vadd.f32 %v807_v10, %v186_v29 }
  0xd2   :  { %659 = vpow2.f32 %v356_v24  ;;  %v323_v34 = vsub.f32 0.0, %v826_v27  ;;  %v331_v35 = vsub.f32 0.0, %v829_v28  ;;  %v837_v36 = vadd.f32 %v807_v10, %v218_v30  ;;  %v630_v37 = vpop.f32.mrf.mxu0  ;;  %v638_v38 = vpop.f32.mrf.mxu1 }
  0xd3   :  { %661 = vpow2.f32 %v336_v31  ;;  %v321_v39 = vsub.f32 0.0, %v832_v33  ;;  %v841_v40 = vadd.f32 %v630_v37, %v807_v10  ;;  %v844_v41 = vadd.f32 %v638_v38, %v807_v10 }
  0xd4   :  { %663 = vpow2.f32 %v352_v32  ;;  %v342_v42 = vmul.f32 1.442695, %v323_v34  ;;  %v358_v43 = vmul.f32 1.442695, %v331_v35  ;;  %v329_v44 = vsub.f32 0.0, %v837_v36  ;;  %v199_v45 = vpop.f32.mrf.mxu0  ;;  %v231_v46 = vpop.f32.mrf.mxu1 }
  0xd5   :  { %v338_v47 = vmul.f32 1.442695, %v321_v39  ;;  %v326_v48 = vsub.f32 0.0, %v841_v40  ;;  %v334_v49 = vsub.f32 0.0, %v844_v41  ;;  %v850_v50 = vadd.f32 %v807_v10, %v199_v45 }
  0xd6   :  { %665 = vpow2.f32 %v342_v42  ;;  %v354_v51 = vmul.f32 1.442695, %v329_v44  ;;  %v853_v52 = vadd.f32 %v807_v10, %v231_v46  ;;  %v631_v53 = vpop.f32.mrf.mxu0  ;;  %v639_v54 = vpop.f32.mrf.mxu1 }
  0xd7   :  { %667 = vpow2.f32 %v358_v43  ;;  %v348_v55 = vmul.f32 1.442695, %v326_v48  ;;  %v364_v56 = vmul.f32 1.442695, %v334_v49  ;;  %v324_v57 = vsub.f32 0.0, %v850_v50 }
  0xd8   :  { %669 = vpow2.f32 %v338_v47  ;;  %v332_v58 = vsub.f32 0.0, %v853_v52  ;;  %v858_v59 = vadd.f32 %v631_v53, %v807_v10  ;;  %v861_v60 = vadd.f32 %v639_v54, %v807_v10  ;;  %v202_v61 = vpop.f32.mrf.mxu0  ;;  %v234_v62 = vpop.f32.mrf.mxu1 }
  0xd9   :  { %671 = vpow2.f32 %v354_v51  ;;  %v344_v63 = vmul.f32 1.442695, %v324_v57  ;;  %v864_v0 = vadd.f32 %v807_v10, %v202_v61  ;;  %v867_v1 = vadd.f32 %v807_v10, %v234_v62 }
  0xda   :  { %673 = vpow2.f32 %v348_v55  ;;  %v360_v2 = vmul.f32 1.442695, %v332_v58  ;;  %v327_v3 = vsub.f32 0.0, %v858_v59  ;;  %v335_v4 = vsub.f32 0.0, %v861_v60 }
  0xdb   :  { %675 = vpow2.f32 %v364_v56  ;;  %v325_v5 = vsub.f32 0.0, %v864_v0  ;;  %v333_v9 = vsub.f32 0.0, %v867_v1 }
  0xdc   :  { %677 = vpow2.f32 %v344_v63  ;;  %v350_v6 = vmul.f32 1.442695, %v327_v3  ;;  %v366_v7 = vmul.f32 1.442695, %v335_v4 }
  0xdd   :  { %679 = vpow2.f32 %v360_v2  ;;  %v346_v8 = vmul.f32 1.442695, %v325_v5  ;;  %v362_v21 = vmul.f32 1.442695, %v333_v9 }
  0xde   :  { %v658_v11 = vpop.eup %657  ;;  %681 = vpow2.f32 %v350_v6 }
  0xdf   :  { %v660_v10 = vpop.eup %659  ;;  %v370_v12 = vadd.f32 1.0, %v658_v11  ;;  %683 = vpow2.f32 %v366_v7 }
  0xe0   :  { %v662_v15 = vpop.eup %661  ;;  %v378_v16 = vadd.f32 1.0, %v660_v10  ;;  %685 = vpow2.f32 %v346_v8 }
  0xe1   :  { %v664_v17 = vpop.eup %663  ;;  %687 = vrcp.f32 %v370_v12  ;;  %v368_v18 = vadd.f32 1.0, %v662_v15 }
  0xe2   :  { %689 = vrcp.f32 %v378_v16  ;;  %v376_v22 = vadd.f32 1.0, %v664_v17 }
  0xe3   :  { %v666_v23 = vpop.eup %665  ;;  %691 = vrcp.f32 %v368_v18 }
  0xe4   :  { %v668_v24 = vpop.eup %667  ;;  %693 = vrcp.f32 %v376_v22  ;;  %v371_v25 = vadd.f32 1.0, %v666_v23 }
  0xe5   :  { %v670_v26 = vpop.eup %669  ;;  %v379_v29 = vadd.f32 1.0, %v668_v24  ;;  %695 = vpow2.f32 %v362_v21 }
  0xe6   :  { %v672_v30 = vpop.eup %671  ;;  %697 = vrcp.f32 %v371_v25  ;;  %v369_v31 = vadd.f32 1.0, %v670_v26 }
  0xe7   :  { %v674_v32 = vpop.eup %673  ;;  %699 = vrcp.f32 %v379_v29  ;;  %v377_v34 = vadd.f32 1.0, %v672_v30 }
  0xe8   :  { %v676_v35 = vpop.eup %675  ;;  %701 = vrcp.f32 %v369_v31  ;;  %v374_v37 = vadd.f32 1.0, %v674_v32 }
  0xe9   :  { %v678_v38 = vpop.eup %677  ;;  %703 = vrcp.f32 %v377_v34  ;;  %v382_v39 = vadd.f32 1.0, %v676_v35 }
  0xea   :  { %v680_v42 = vpop.eup %679  ;;  %v372_v43 = vadd.f32 1.0, %v678_v38  ;;  %705 = vrcp.f32 %v374_v37 }
  0xeb   :  { %v682_v44 = vpop.eup %681  ;;  %707 = vrcp.f32 %v382_v39  ;;  %v380_v54 = vadd.f32 1.0, %v680_v42 }
  0xec   :  { %v684_v45 = vpop.eup %683  ;;  %v375_v46 = vadd.f32 1.0, %v682_v44  ;;  %709 = vrcp.f32 %v372_v43 }
  0xed   :  { %v686_v47 = vpop.eup %685  ;;  %v383_v48 = vadd.f32 1.0, %v684_v45 }
  0xee   :  { %v688_v49 = vpop.eup %687  ;;  %711 = vrcp.f32 %v375_v46  ;;  %v373_v51 = vadd.f32 1.0, %v686_v47 }
  0xef   :  { %v690_v53 = vpop.eup %689  ;;  %713 = vrcp.f32 %v383_v48  ;;  %v402_v63 = vmul.f32 %v688_v49, %v810_v13 }
  0xf0   :  { %v692_v55 = vpop.eup %691  ;;  %715 = vrcp.f32 %v373_v51  ;;  %v410_v4 = vmul.f32 %v690_v53, %v813_v14 }
  0xf1   :  { %v694_v56 = vpop.eup %693  ;;  %717 = vrcp.f32 %v380_v54  ;;  %v400_v7 = vmul.f32 %v692_v55, %v818_v19 }
  0xf2   :  { %v696_v57 = vpop.eup %695  ;;  %v408_v11 = vmul.f32 %v694_v56, %v821_v20 }
  0xf3   :  { %v698_v58 = vpop.eup %697  ;;  %v381_v61 = vadd.f32 1.0, %v696_v57 }
  0xf4   :  { %v700_v62 = vpop.eup %699  ;;  %v403_v2 = vmul.f32 %v698_v58, %v826_v27 }
  0xf5   :  { %v702_v3 = vpop.eup %701  ;;  %v411_v5 = vmul.f32 %v700_v62, %v829_v28  ;;  %719 = vrcp.f32 %v381_v61 }
  0xf6   :  { %v704_v6 = vpop.eup %703  ;;  %v571_v8 = vpack.c.bf16 %v403_v2, %v402_v63  ;;  %v401_v9 = vmul.f32 %v702_v3, %v832_v33 }
  0xf7   :  { %v591_v10 = vpack.c.bf16 %v411_v5, %v410_v4  ;;  %v409_v12 = vmul.f32 %v704_v6, %v837_v36  ;;  %v706_v13 = vpop.eup %705 }
  0xf8   :  { %603 = vst [vmem:[#allocation3 + $0x8] sm:$0xff] %v571_v8   ;;  %v566_v27 = vpack.c.bf16 %v401_v9, %v400_v7  ;;  %v708_v15 = vpop.eup %707  ;;  %v406_v19 = vmul.f32 %v706_v13, %v841_v40 }
  0xf9   :  { %607 = vst [vmem:[#allocation3 + $0x28] sm:$0xff] %v591_v10   ;;  %v586_v14 = vpack.c.bf16 %v409_v12, %v408_v11  ;;  %v710_v16 = vpop.eup %709  ;;  %v414_v20 = vmul.f32 %v708_v15, %v844_v41 }
  0xfa   :  { %567 = vst [vmem:[#allocation3] sm:$0xff] %v566_v27   ;;  %v404_v21 = vmul.f32 %v710_v16, %v850_v50 }
  0xfb   :  { %v712_v28 = vpop.eup %711  ;;  %606 = vst [vmem:[#allocation3 + $0x20] sm:$0xff] %v586_v14  }
  0xfc   :  { %v714_v17 = vpop.eup %713  ;;  %v407_v33 = vmul.f32 %v712_v28, %v858_v59 }
  0xfd   :  { %v716_v18 = vpop.eup %715  ;;  %v415_v36 = vmul.f32 %v714_v17, %v861_v60 }
  0xfe   :  { %v581_v22 = vpack.c.bf16 %v407_v33, %v406_v19  ;;  %v405_v23 = vmul.f32 %v716_v18, %v864_v0  ;;  %v718_v25 = vpop.eup %717 }
  0xff   :  { %v601_v24 = vpack.c.bf16 %v415_v36, %v414_v20  ;;  %v412_v59 = vmul.f32 %v718_v25, %v853_v52 }
 0x100   :  { %605 = vst [vmem:[#allocation3 + $0x18] sm:$0xff] %v581_v22   ;;  %v576_v26 = vpack.c.bf16 %v405_v23, %v404_v21 }
 0x101   :  { %609 = vst [vmem:[#allocation3 + $0x38] sm:$0xff] %v601_v24  }
 0x102   :  { %v720_v40 = vpop.eup %719  ;;  %604 = vst [vmem:[#allocation3 + $0x10] sm:$0xff] %v576_v26  }
 0x103   :  { %v413_v41 = vmul.f32 %v720_v40, %v867_v1 }
 0x105   :  { %v596_v60 = vpack.c.bf16 %v413_v41, %v412_v59 }
 0x107   :  { %608 = vst [vmem:[#allocation3 + $0x30] sm:$0xff] %v596_v60  }
 0x108   :  { %732 = shalt.err (!%p729_p4)
}
 0x109   :  { %s744_s7 = smov 64   ;;  %s745_s8 = smov 4  }
 0x10a   :  { %507 = dma.vmem_to_hbm [thread:$0]  %s502_s2, 1024, %s895_s3, [#allocation4], %s744_s7, %s744_s7, %s745_s8  }
 0x10b   :  { %741 = dma.done.wait [#allocation4], 1024  }
 0x10c   :  { %742 = vsyncadd [#allocation4], 4294966272 }
 0x10d   :  { %511 = vsyncpa [#allocation4], 1 }

</bundles_post_ra>
